<compile_context>
chip_gen: v7x
topology: tpu7x:2x2x1
jax: 0.10.0
libtpu: 0.0.40
codegen_flags: <defaults>
</compile_context>

<pallas_src>
import functools

import jax
import jax.numpy as jnp
from jax.experimental import pallas as pl
from jax.experimental.pallas import tpu as pltpu

LANE = 128  # lane width on every TPU generation


def _round_up(n, m):
    return ((n + m - 1) // m) * m


# ----------------------------------------------------------------------------
# Kernel
# ----------------------------------------------------------------------------
def mlp_policy_kernel(x_ref, w_ref, b_ref, o_ref):
    # x_ref: [bb, d_state] f32   w_ref: [3*128, 128] bf16   b_ref: [8, 128] f32
    # o_ref: [bb, 128] bf16
    D = w_ref.shape[0] // 3          # 128 (per-layer row stride in the packed slab)
    d_state = x_ref.shape[1]         # natural input width (e.g. 16)

    x = x_ref[...].astype(jnp.bfloat16)           # [bb, d_state]
    w1 = w_ref[0:d_state, :]                      # only the real rows of W1
    w2 = w_ref[1 * D:2 * D, :]
    w3 = w_ref[2 * D:3 * D, :]

    b = b_ref[...]
    b1, b2, b3 = b[0:1, :], b[1:2, :], b[2:3, :]

    # linear1 + ReLU   (bf16 operands, f32 accumulation on the MXU)
    h1 = jnp.dot(x, w1, preferred_element_type=jnp.float32)
    h1 = jnp.maximum(h1 + b1, 0.0)

    # linear2 + ReLU
    h2 = jnp.dot(h1.astype(jnp.bfloat16), w2, preferred_element_type=jnp.float32)
    h2 = jnp.maximum(h2 + b2, 0.0)

    # head (no activation)
    out = jnp.dot(h2.astype(jnp.bfloat16), w3, preferred_element_type=jnp.float32)
    o_ref[...] = (out + b3).astype(o_ref.dtype)   # bf16 lane-dense store


# ----------------------------------------------------------------------------
# Wrapper
# ----------------------------------------------------------------------------
def mlp_policy_forward(x, w_packed, b_packed, d_action, *, block_b=1024):
    """x: [B, d_state] f32. w_packed: [3*128,128] bf16. b_packed: [8,128] f32."""
    B, d_state = x.shape
    D = w_packed.shape[1]  # 128

    # Rows per grid step: as large as possible (amortize per-step overhead) but
    # capped at ceil(B/2) so the "parallel" batch axis has >= 2 steps for big
    # batches (keeps both v7x TensorCores busy). Always a multiple of 8.
    half = _round_up(-(-B // 2), 8)
    bb = max(8, min(_round_up(block_b, 8), half))
    B_pad = _round_up(B, bb)

    # Only row padding (zeros) to a multiple of bb; keep the natural d_state
    # column width so the kernel streams d_state cols/row instead of 128.
    if B_pad != B:
        x_in = jnp.pad(x, ((0, B_pad - B), (0, 0)))
    else:
        x_in = x

    out_pad = pl.pallas_call(
        mlp_policy_kernel,
        # bf16 lane-dense output: unmasked vst, half the f32 store traffic.
        out_shape=jax.ShapeDtypeStruct((B_pad, D), jnp.bfloat16),
        grid=(B_pad // bb,),
        in_specs=[
            pl.BlockSpec((bb, d_state), lambda i: (i, 0)),      # x: natural width
            pl.BlockSpec(w_packed.shape, lambda i: (0, 0)),     # weights: resident
            pl.BlockSpec(b_packed.shape, lambda i: (0, 0)),     # biases: resident
        ],
        out_specs=pl.BlockSpec((bb, D), lambda i: (i, 0)),      # lane-dense output
        compiler_params=pltpu.CompilerParams(
            dimension_semantics=("parallel",),                  # shard over TCs (v7x)
            vmem_limit_bytes=32 * 1024 * 1024,                  # keep at 32 MiB (v7x-safe)
        ),
    )(x_in, w_packed, b_packed)

    return out_pad[:B, :d_action].astype(jnp.float32)


# ----------------------------------------------------------------------------
# Parameter packing / init / reference
# ----------------------------------------------------------------------------
def pack_params(params, d_state, d_hidden, d_action, D=LANE):
    """Pack (w1,b1,w2,b2,w3,b3) into one bf16 weight slab + one f32 bias slab."""
    assert d_state <= D and d_hidden <= D and d_action <= D

    def pad2(w):
        return jnp.zeros((D, D), jnp.float32).at[:w.shape[0], :w.shape[1]].set(w)

    w_packed = jnp.concatenate(
        [pad2(params["w1"]), pad2(params["w2"]), pad2(params["w3"])], axis=0
    ).astype(jnp.bfloat16)                                   # [3*128, 128]

    b_packed = jnp.zeros((8, D), jnp.float32)
    b_packed = b_packed.at[0, :d_hidden].set(params["b1"].reshape(-1))
    b_packed = b_packed.at[1, :d_hidden].set(params["b2"].reshape(-1))
    b_packed = b_packed.at[2, :d_action].set(params["b3"].reshape(-1))
    return w_packed, b_packed


def unpack_quantized(w_packed, b_packed, d_state, d_hidden, d_action):
    """Recover the (bf16-quantized) weights as f32 for the reference check."""
    D = w_packed.shape[1]
    wq = w_packed.astype(jnp.float32)
    w1 = wq[0 * D:1 * D][:d_state, :d_hidden]
    w2 = wq[1 * D:2 * D][:d_hidden, :d_hidden]
    w3 = wq[2 * D:3 * D][:d_hidden, :d_action]
    b1 = b_packed[0, :d_hidden]
    b2 = b_packed[1, :d_hidden]
    b3 = b_packed[2, :d_action]
    return w1, b1, w2, b2, w3, b3


def init_params(key, d_state, d_hidden, d_action):
    """Deterministic init mimicking nn.Linear's uniform(-1/sqrt(in), 1/sqrt(in))."""
    ks = jax.random.split(key, 6)

    def linear(kw, kb, d_in, d_out):
        bound = 1.0 / jnp.sqrt(d_in)
        w = jax.random.uniform(kw, (d_in, d_out), jnp.float32, -bound, bound)
        b = jax.random.uniform(kb, (1, d_out), jnp.float32, -bound, bound)
        return w, b

    w1, b1 = linear(ks[0], ks[1], d_state, d_hidden)
    w2, b2 = linear(ks[2], ks[3], d_hidden, d_hidden)
    w3, b3 = linear(ks[4], ks[5], d_hidden, d_action)
    return dict(w1=w1, b1=b1, w2=w2, b2=b2, w3=w3, b3=b3)


def reference_forward(x, w1, b1, w2, b2, w3, b3):
    h1 = jnp.maximum(x @ w1 + b1, 0.0)
    h2 = jnp.maximum(h1 @ w2 + b2, 0.0)
    return h2 @ w3 + b3


# ----------------------------------------------------------------------------
# Test
# ----------------------------------------------------------------------------
if __name__ == "__main__":
    d_state, d_hidden, d_action = 16, 32, 4

    key = jax.random.PRNGKey(0)
    k_x, k_p, k_x2 = jax.random.split(key, 3)
    params = init_params(k_p, d_state, d_hidden, d_action)
    w_packed, b_packed = pack_params(params, d_state, d_hidden, d_action)
    ref_params = unpack_quantized(w_packed, b_packed, d_state, d_hidden, d_action)

    fwd = jax.jit(functools.partial(mlp_policy_forward, d_action=d_action))

    # Small batch (single grid step, no row padding).
    x = jax.random.normal(k_x, (8, d_state), jnp.float32)
    out = jax.block_until_ready(fwd(x, w_packed, b_packed))
    ref = reference_forward(x, *ref_params)
    assert out.shape == (8, d_action)
    assert jnp.allclose(out, ref, atol=3e-2, rtol=3e-2)

    # Larger batch exercising the 2-step batch grid + row padding (260 -> 272).
    x2 = jax.random.normal(k_x2, (260, d_state), jnp.float32)
    out2 = jax.block_until_ready(fwd(x2, w_packed, b_packed))
    ref2 = reference_forward(x2, *ref_params)
    assert out2.shape == (260, d_action)
    assert jnp.allclose(out2, ref2, atol=3e-2, rtol=3e-2)

    print("KERNEL_OK")
</pallas_src>

<mosaic_0001>
module attributes {stable_mosaic.version = 11 : i64} {
  func.func @mlp_policy_kernel(%arg0: i32, %arg1: memref<8x16xf32, #tpu.memory_space<vmem>>, %arg2: memref<384x128xbf16, #tpu.memory_space<vmem>>, %arg3: memref<8x128xf32, #tpu.memory_space<vmem>>, %arg4: memref<8x128xbf16, #tpu.memory_space<vmem>>) attributes {dimension_semantics = [#tpu.dimension_semantics<parallel>], iteration_bounds = array<i64: 1>, scalar_prefetch = 0 : i64, scratch_operands = 0 : i64, tpu.core_type = #tpu.core_type<tc>, window_params = [{transform_indices = @transform_0, window_bounds = array<i64: 8, 16>}, {pipeline_mode = #tpu.pipeline_mode<synchronous>, transform_indices = @transform_1, window_bounds = array<i64: 384, 128>}, {pipeline_mode = #tpu.pipeline_mode<synchronous>, transform_indices = @transform_2, window_bounds = array<i64: 8, 128>}, {transform_indices = @transform_3, window_bounds = array<i64: 8, 128>}]} {
    %c0 = arith.constant 0 : index
    %c0_0 = arith.constant 0 : index
    %0 = vector.load %arg1[%c0, %c0_0] : memref<8x16xf32, #tpu.memory_space<vmem>>, vector<8x16xf32>
    %1 = arith.truncf %0 : vector<8x16xf32> to vector<8x16xbf16>
    %c0_1 = arith.constant 0 : index
    %c0_2 = arith.constant 0 : index
    %2 = vector.load %arg2[%c0_1, %c0_2] : memref<384x128xbf16, #tpu.memory_space<vmem>>, vector<16x128xbf16>
    %c128 = arith.constant 128 : index
    %c0_3 = arith.constant 0 : index
    %3 = vector.load %arg2[%c128, %c0_3] : memref<384x128xbf16, #tpu.memory_space<vmem>>, vector<128x128xbf16>
    %c256 = arith.constant 256 : index
    %c0_4 = arith.constant 0 : index
    %4 = vector.load %arg2[%c256, %c0_4] : memref<384x128xbf16, #tpu.memory_space<vmem>>, vector<128x128xbf16>
    %c0_5 = arith.constant 0 : index
    %c0_6 = arith.constant 0 : index
    %5 = vector.load %arg3[%c0_5, %c0_6] : memref<8x128xf32, #tpu.memory_space<vmem>>, vector<8x128xf32>
    %6 = vector.extract_strided_slice %5 {offsets = [0, 0], sizes = [1, 128], strides = [1, 1]} : vector<8x128xf32> to vector<1x128xf32>
    %7 = vector.extract_strided_slice %5 {offsets = [1, 0], sizes = [1, 128], strides = [1, 1]} : vector<8x128xf32> to vector<1x128xf32>
    %8 = vector.extract_strided_slice %5 {offsets = [2, 0], sizes = [1, 128], strides = [1, 1]} : vector<8x128xf32> to vector<1x128xf32>
    %cst = arith.constant dense<0.000000e+00> : vector<8x128xf32>
    %9 = tpu.matmul %1, %2, %cst {dimension_numbers = #tpu.dot_dimension_numbers<[1], [0], [0], [1], [0, 0, 1, 1], [], []>} : vector<8x16xbf16>, vector<16x128xbf16>, vector<8x128xf32> -> vector<8x128xf32>
    %10 = vector.broadcast %6 : vector<1x128xf32> to vector<8x128xf32>
    %11 = arith.addf %9, %10 : vector<8x128xf32>
    %cst_7 = arith.constant 0.000000e+00 : f32
    %12 = vector.broadcast %cst_7 : f32 to vector<8x128xf32>
    %13 = arith.maximumf %11, %12 : vector<8x128xf32>
    %14 = arith.truncf %13 : vector<8x128xf32> to vector<8x128xbf16>
    %cst_8 = arith.constant dense<0.000000e+00> : vector<8x128xf32>
    %15 = tpu.matmul %14, %3, %cst_8 {dimension_numbers = #tpu.dot_dimension_numbers<[1], [0], [0], [1], [0, 0, 1, 1], [], []>} : vector<8x128xbf16>, vector<128x128xbf16>, vector<8x128xf32> -> vector<8x128xf32>
    %16 = vector.broadcast %7 : vector<1x128xf32> to vector<8x128xf32>
    %17 = arith.addf %15, %16 : vector<8x128xf32>
    %cst_9 = arith.constant 0.000000e+00 : f32
    %18 = vector.broadcast %cst_9 : f32 to vector<8x128xf32>
    %19 = arith.maximumf %17, %18 : vector<8x128xf32>
    %20 = arith.truncf %19 : vector<8x128xf32> to vector<8x128xbf16>
    %cst_10 = arith.constant dense<0.000000e+00> : vector<8x128xf32>
    %21 = tpu.matmul %20, %4, %cst_10 {dimension_numbers = #tpu.dot_dimension_numbers<[1], [0], [0], [1], [0, 0, 1, 1], [], []>} : vector<8x128xbf16>, vector<128x128xbf16>, vector<8x128xf32> -> vector<8x128xf32>
    %22 = vector.broadcast %8 : vector<1x128xf32> to vector<8x128xf32>
    %23 = arith.addf %21, %22 : vector<8x128xf32>
    %24 = arith.truncf %23 : vector<8x128xf32> to vector<8x128xbf16>
    %c0_11 = arith.constant 0 : index
    %c0_12 = arith.constant 0 : index
    %25 = vector.load %arg4[%c0_11, %c0_12] : memref<8x128xbf16, #tpu.memory_space<vmem>>, vector<8x128xbf16>
    tpu.vector_store %arg4[%c0_11, %c0_12], %24 {strides = array<i32>} : memref<8x128xbf16, #tpu.memory_space<vmem>>, vector<8x128xbf16>,
    return
  }
  func.func @transform_0(%arg0: i32) -> (i32, i32) {
    %c0_i32 = arith.constant 0 : i32
    %c0_i32_0 = arith.constant 0 : i32
    return %arg0, %c0_i32 : i32, i32
  }
  func.func @transform_1(%arg0: i32) -> (i32, i32) {
    %c0_i32 = arith.constant 0 : i32
    %c0_i32_0 = arith.constant 0 : i32
    %c0_i32_1 = arith.constant 0 : i32
    return %c0_i32, %c0_i32_0 : i32, i32
  }
  func.func @transform_2(%arg0: i32) -> (i32, i32) {
    %c0_i32 = arith.constant 0 : i32
    %c0_i32_0 = arith.constant 0 : i32
    %c0_i32_1 = arith.constant 0 : i32
    return %c0_i32, %c0_i32_0 : i32, i32
  }
  func.func @transform_3(%arg0: i32) -> (i32, i32) {
    %c0_i32 = arith.constant 0 : i32
    %c0_i32_0 = arith.constant 0 : i32
    return %arg0, %c0_i32 : i32, i32
  }
}

</mosaic_0001>

<bundles_post_ra>
// kernel: mlp_policy_forward.1
= control target key start
LH: loop header
LB: loop body
LE: loop exit
PB: predicated region body
PF: predicated region fallthrough
CT: control target
= control target key end

     0   :  { %8 = vsyncpa [#allocation3], 0  ;;  %s603_s0 = inlined_call_operand.hbm [shape: f32[8,16], index: 0, kind: input, shape index: {}]   ;;  %s604_s1 = inlined_call_operand.hbm [shape: bf16[384,128], index: 1, kind: input, shape index: {}]   ;;  %s605_s2 = inlined_call_operand.hbm [shape: f32[8,128], index: 2, kind: input, shape index: {}]   ;;  %s606_s3 = inlined_call_operand.vmem [shape: bf16[8,128], index: 3, kind: output, shape index: {}]  }
   0x1   :  { %9 = vsyncpa [#allocation5], 0  ;;  %s517_s12 = smov [#allocation4]   ;;  %s447_s16 = scalar_lea.hbm %s604_s1, 3072 }
   0x2   :  { %s25_s13 = sshll.u32 %s517_s12, 4  ;;  %p448_p0 = scmp.ne.s32.totalorder %s604_s1, %s447_s16  ;;  %s26_s13 = int_to_ptr.vmem [resolvable:$true] %s25_s13 }
   0x3   :  { %p451_p1 = scmp.lt.u32.totalorder %s447_s16, %s604_s1 }
   0x5   :  { %p453_p2 = pnand %p451_p1, %p448_p0 }
   0x7   :  { %456 = shalt.err (!%p453_p2)
}
   0x8   :  { %s457_s21 = scalar_lea.vmem %s26_s13, 3072  ;;  %p462_p4 = scmp.lt.s32.totalorder %s26_s13, %s26_s13 }
   0x9   :  { %p458_p3 = scmp.ne.s32.totalorder %s26_s13, %s457_s21  ;;  %p463_p5 = scmp.lt.s32.totalorder %s457_s21, %s457_s21 }
   0xb   :  { %p464_p6 = por %p463_p5, %p462_p4 }
   0xd   :  { %p465_p7 = pnand %p464_p6, %p458_p3 }
   0xf   :  { %468 = shalt.err (!%p465_p7)
}
  0x10   :  { %s518_s22 = smov 64   ;;  %s519_s23 = smov 4  }
  0x11   :  { %31 = dma.hbm_to_vmem [thread:$0]  %s604_s1, 3072, %s26_s13, [#allocation5], %s518_s22, %s518_s22, %s519_s23  }
  0x12   :  { %s520_s26 = smov [#allocation2]   ;;  %s521_s28 = smov [#allocation6]  }
  0x13   :  { %s16_s27 = sshll.u32 %s520_s26, 4  ;;  %s38_s29 = sshll.u32 %s521_s28, 4  ;;  %s17_s27 = int_to_ptr.vmem [resolvable:$true] %s16_s27  ;;  %s39_s29 = int_to_ptr.vmem [resolvable:$true] %s38_s29 }
  0x14   :  { %s469_s5 = scalar_lea.hbm %s603_s0, 128 }
  0x15   :  { %p470_p8 = scmp.ne.s32.totalorder %s603_s0, %s469_s5  ;;  %p473_p9 = scmp.lt.u32.totalorder %s469_s5, %s603_s0 }
  0x17   :  { %p475_p10 = pnand %p473_p9, %p470_p8 }
  0x19   :  { %478 = shalt.err (!%p475_p10)
}
  0x1a   :  { %s479_s1 = scalar_lea.vmem %s17_s27, 128  ;;  %p484_p12 = scmp.lt.s32.totalorder %s17_s27, %s17_s27 }
  0x1b   :  { %p480_p11 = scmp.ne.s32.totalorder %s17_s27, %s479_s1  ;;  %p485_p13 = scmp.lt.s32.totalorder %s479_s1, %s479_s1 }
  0x1d   :  { %p486_p0 = por %p485_p13, %p484_p12 }
  0x1f   :  { %p487_p1 = pnand %p486_p0, %p480_p11 }
  0x21   :  { %490 = shalt.err (!%p487_p1)
}
  0x22   :  { %19 = dma.hbm_to_vmem [thread:$0]  %s603_s0, 128, %s17_s27, [#allocation3]  }
  0x23   :  { %s491_s14 = scalar_lea.hbm %s605_s2, 128 }
  0x24   :  { %p492_p2 = scmp.ne.s32.totalorder %s605_s2, %s491_s14  ;;  %p495_p3 = scmp.lt.u32.totalorder %s491_s14, %s605_s2 }
  0x26   :  { %p497_p4 = pnand %p495_p3, %p492_p2 }
  0x28   :  { %500 = shalt.err (!%p497_p4)
}
  0x29   :  { %s501_s19 = scalar_lea.vmem %s39_s29, 128  ;;  %p506_p6 = scmp.lt.s32.totalorder %s39_s29, %s39_s29 }
  0x2a   :  { %p502_p5 = scmp.ne.s32.totalorder %s39_s29, %s501_s19  ;;  %p507_p7 = scmp.lt.s32.totalorder %s501_s19, %s501_s19 }
  0x2c   :  { %p508_p8 = por %p507_p7, %p506_p6 }
  0x2e   :  { %p509_p9 = pnand %p508_p8, %p502_p5 }
  0x30   :  { %512 = shalt.err (!%p509_p9)
}
  0x31   :  { %41 = dma.hbm_to_vmem [thread:$0]  %s605_s2, 128, %s39_s29, [#allocation5]  }
  0x32   :  { %513 = dma.done.wait [#allocation3], 128  }
  0x33   :  { %514 = vsyncadd [#allocation3], 4294967168 }
  0x34   :  { %515 = dma.done.wait [#allocation5], 3200  }
  0x35   :  { %516 = vsyncadd [#allocation5], 4294964096  ;;  %v522_v0 = vmov 0.0   ;;  %vm523_vm0 = vmmov 0   ;;  %v430_v1 = vld [vmem:[#allocation4] sm:$0xff]   ;;  %v52_v2 = vld [vmem:[#allocation2] sm:$0xff]  ;;  %v89_v18 = vlaneseq }
  0x36   :  { %377 = vmatprep.subr.bf16.mxu0 %v522_v0  ;;  %379 = vmatprep.mubr.msk.bf16.mxu0 %vm523_vm0, %v522_v0  ;;  %v53_v3 = vpack.c.bf16 %v52_v2, %v52_v2  ;;  %vm99_vm1 = vcmask 130048   ;;  %v431_v4 = vld [vmem:[#allocation4 + $0x40] sm:$0xff]   ;;  %v432_v5 = vld [vmem:[#allocation4 + $0x48] sm:$0xff]   ;;  %v433_v6 = vld [vmem:[#allocation4 + $0x50] sm:$0xff]  }
  0x37   :  { %383 = vmatprep.subr.bf16.mxu1 %v522_v0  ;;  %399 = vmatprep.mubr.msk.bf16.mxu1 %vm523_vm0, %v522_v0  ;;  %v434_v7 = vld [vmem:[#allocation4 + $0x58] sm:$0xff]   ;;  %v435_v8 = vld [vmem:[#allocation4 + $0x60] sm:$0xff]   ;;  %v436_v9 = vld [vmem:[#allocation4 + $0x68] sm:$0xff]   ;;  %v90_v19 = vshrl.u32 %v89_v18, 7 }
  0x38   :  { %378 = vmatpush3.bf16.msra.mxu0 %v430_v1  ;;  %384 = vmatpush3.bf16.msra.mxu1 %v431_v4  ;;  %v437_v10 = vld [vmem:[#allocation4 + $0x70] sm:$0xff]   ;;  %v438_v11 = vld [vmem:[#allocation4 + $0x78] sm:$0xff]   ;;  %v439_v12 = vld [vmem:[#allocation4 + $0x80] sm:$0xff]  }
  0x39   :  { %403 = vmatprep.subr.bf16.mxu0 %v522_v0  ;;  %385 = vmatprep.subr.bf16.mxu1 %v522_v0  ;;  %v440_v13 = vld [vmem:[#allocation4 + $0x88] sm:$0xff]   ;;  %v441_v14 = vld [vmem:[#allocation4 + $0x90] sm:$0xff]   ;;  %v442_v15 = vld [vmem:[#allocation4 + $0x98] sm:$0xff]   ;;  %v91_v20 = vsub.s32 0, %v90_v19  ;;  %v147_v32 = vsub.s32 1, %v90_v19  ;;  %v241_v41 = vsub.s32 2, %v90_v19 }
  0x3a   :  { %v443_v16 = vld [vmem:[#allocation4 + $0xa0] sm:$0xff]   ;;  %v444_v17 = vld [vmem:[#allocation4 + $0xa8] sm:$0xff]   ;;  %v445_v30 = vld [vmem:[#allocation4 + $0xb0] sm:$0xff]  }
  0x3b   :  { %380 = vmatmul.mubr.msk.bf16.vlgmr.msra.gmra.mrb[0].mxu0 %vm99_vm1, %v53_v3  ;;  %v88_v21 = vld [vmem:[#allocation6] sm:$0xff]  ;;  %v446_v31 = vld [vmem:[#allocation4 + $0xb8] sm:$0xff]  }
  0x3c   :  { %419 = vmatprep.mubr.msk.bf16.mxu0 %vm523_vm0, %v522_v0  ;;  %386 = vmatpush3.bf16.msra.mxu1 %v432_v5  ;;  %v92_v22 = vrot.slane %v88_v21, %v91_v20  ;;  %v148_v33 = vrot.slane %v88_v21, %v147_v32  ;;  %v242_v42 = vrot.slane %v88_v21, %v241_v41 }
  0x3d   :  { %387 = vmatprep.subr.bf16.mxu1 %v522_v0  ;;  %404 = vmatpush3.bf16.msra.mxu0 %v439_v12 }
  0x3e   :  { %405 = vmatprep.subr.bf16.mxu0 %v522_v0 }
  0x40   :  { %388 = vmatpush3.bf16.msra.mxu1 %v433_v6 }
  0x41   :  { %389 = vmatprep.subr.bf16.mxu1 %v522_v0  ;;  %406 = vmatpush3.bf16.msra.mxu0 %v440_v13 }
  0x42   :  { %407 = vmatprep.subr.bf16.mxu0 %v522_v0 }
  0x44   :  { %390 = vmatpush3.bf16.msra.mxu1 %v434_v7 }
  0x45   :  { %391 = vmatprep.subr.bf16.mxu1 %v522_v0  ;;  %408 = vmatpush3.bf16.msra.mxu0 %v441_v14 }
  0x46   :  { %409 = vmatprep.subr.bf16.mxu0 %v522_v0 }
  0x48   :  { %392 = vmatpush3.bf16.msra.mxu1 %v435_v8 }
  0x49   :  { %393 = vmatprep.subr.bf16.mxu1 %v522_v0  ;;  %410 = vmatpush3.bf16.msra.mxu0 %v442_v15 }
  0x4a   :  { %411 = vmatprep.subr.bf16.mxu0 %v522_v0 }
  0x4c   :  { %394 = vmatpush3.bf16.msra.mxu1 %v436_v9 }
  0x4d   :  { %395 = vmatprep.subr.bf16.mxu1 %v522_v0  ;;  %412 = vmatpush3.bf16.msra.mxu0 %v443_v16 }
  0x4e   :  { %413 = vmatprep.subr.bf16.mxu0 %v522_v0 }
  0x50   :  { %396 = vmatpush3.bf16.msra.mxu1 %v437_v10 }
  0x51   :  { %397 = vmatprep.subr.bf16.mxu1 %v522_v0  ;;  %414 = vmatpush3.bf16.msra.mxu0 %v444_v17 }
  0x52   :  { %415 = vmatprep.subr.bf16.mxu0 %v522_v0 }
  0x54   :  { %398 = vmatpush3.bf16.msra.mxu1 %v438_v11 }
  0x55   :  { %416 = vmatpush3.bf16.msra.mxu0 %v445_v30 }
  0x56   :  { %417 = vmatprep.subr.bf16.mxu0 %v522_v0 }
  0x59   :  { %418 = vmatpush3.bf16.msra.mxu0 %v446_v31 }
 0x10e   :  { %v137_v23 = vpop.f32.mrb[0].mxu0 }
 0x10f   :  { %v138_v24 = vadd.f32 %v137_v23, %v92_v22  ;;  %v381_v25 = vpop.f32.mrb[1].mxu0 }
 0x110   :  { %v140_v26 = vpop.f32.mrb[2].mxu0 }
 0x111   :  { %v143_v27 = vmax.f32 %v138_v24, 0.0  ;;  %v382_v28 = vpop.f32.mrb[3].mxu0 }
 0x113   :  { %v144_v29 = vpack.c.bf16 %v143_v27, %v143_v27 }
 0x115   :  { %400 = vmatmul.mubr.bf16.vlgmr.msra.gmra.mrb[0].mxu1 %v144_v29 }
 0x1e8   :  { %v231_v34 = vpop.f32.mrb[0].mxu1 }
 0x1e9   :  { %v232_v35 = vadd.f32 %v231_v34, %v148_v33  ;;  %v401_v36 = vpop.f32.mrb[1].mxu1 }
 0x1ea   :  { %v234_v37 = vpop.f32.mrb[2].mxu1 }
 0x1eb   :  { %v237_v38 = vmax.f32 %v232_v35, 0.0  ;;  %v402_v39 = vpop.f32.mrb[3].mxu1 }
 0x1ed   :  { %v238_v40 = vpack.c.bf16 %v237_v38, %v237_v38 }
 0x1ef   :  { %420 = vmatmul.mubr.bf16.vlgmr.msra.gmra.mrb[4].mxu0 %v238_v40 }
 0x2c2   :  { %v325_v43 = vpop.f32.mrb[4].mxu0 }
 0x2c3   :  { %v326_v44 = vadd.f32 %v325_v43, %v242_v42  ;;  %v421_v45 = vpop.f32.mrb[5].mxu0 }
 0x2c4   :  { %v328_v46 = vpop.f32.mrb[6].mxu0 }
 0x2c5   :  { %v331_v47 = vpack.c.bf16 %v326_v44, %v326_v44  ;;  %v422_v48 = vpop.f32.mrb[7].mxu0 }
 0x2c7   :  { %332 = vst [vmem:[%s606_s3] sm:$0xf] %v331_v47 }
 0x2c8   :  { %337 = vsyncpa [#allocation3], 1 }
 0x2c9   :  { %338 = vsyncpa [#allocation5], 1 }

</bundles_post_ra>
